<compile_context>
chip_gen: v5e
topology: v5e:2x2
jax: 0.10.0
libtpu: 0.0.40
codegen_flags: <defaults>
</compile_context>

<pallas_src>
import functools

import jax
import jax.numpy as jnp
from jax.experimental import pallas as pl
from jax.experimental.pallas import tpu as pltpu


def _round_up(x: int, m: int) -> int:
    return (x + m - 1) // m * m


def _vmem_budget_bytes() -> int:
    """Per-core VMEM budget with headroom (~80% of physical capacity)."""
    cap = 64 * 1024 * 1024  # conservative default (v7x per-core VMEM)
    try:
        info = pltpu.get_tpu_info()
        cap = int(getattr(info, "vmem_capacity_bytes", cap))
    except Exception:
        pass
    return int(cap * 0.8)


# ---------------------------------------------------------------------------
# Kernels
# ---------------------------------------------------------------------------
def _ffn_resident_kernel(x_ref, w1_ref, b1_ref, w2_ref, b2_ref, o_ref):
    """Weights resident in VMEM; one token tile per grid step, no reduction axis."""
    x = x_ref[...].astype(w1_ref.dtype)                        # per-tile cast
    h = jnp.dot(x, w1_ref[...], preferred_element_type=jnp.float32)   # (TM, FFp)
    h = jnp.maximum(h + b1_ref[...], 0.0)                      # bias + ReLU in f32
    # dropout(p=0.0) is the identity -- nothing to do.
    out = jnp.dot(h.astype(w2_ref.dtype), w2_ref[...],
                  preferred_element_type=jnp.float32)          # (TM, Dp)
    o_ref[...] = (out + b2_ref[...]).astype(o_ref.dtype)


def _ffn_ktiled_kernel(x_ref, w1_ref, b1_ref, w2_ref, b2_ref, o_ref, acc_ref):
    """Fallback: 2-D grid (token tiles, ff_dim slabs) with a f32 accumulator."""
    k = pl.program_id(1)

    @pl.when(k == 0)
    def _():
        acc_ref[...] = jnp.zeros_like(acc_ref)

    x = x_ref[...].astype(w1_ref.dtype)                        # (TM, Dp)
    h = jnp.dot(x, w1_ref[...], preferred_element_type=jnp.float32)   # (TM, TF)
    h = jnp.maximum(h + b1_ref[...], 0.0)
    acc_ref[...] += jnp.dot(h.astype(w2_ref.dtype), w2_ref[...],
                            preferred_element_type=jnp.float32)        # (TM, Dp)

    @pl.when(k == pl.num_programs(1) - 1)
    def _():
        o_ref[...] = (acc_ref[...] + b2_ref[...]).astype(o_ref.dtype)


# ---------------------------------------------------------------------------
# Wrapper
# ---------------------------------------------------------------------------
@functools.partial(jax.jit,
                   static_argnames=("block_m", "block_f", "compute_dtype", "mode"))
def feed_forward(x, w1, b1, w2, b2, *, block_m=None, block_f=1024,
                 compute_dtype=jnp.bfloat16, mode="auto"):
    """x: (batch, seq, d_model); w1: (ff_dim, d_model); b1: (ff_dim,);
       w2: (d_model, ff_dim); b2: (d_model,). Matches nn.Linear conventions.
       mode: "auto" | "resident" | "ktiled" (path selection override)."""
    batch, seq, d_model = x.shape
    ff_dim = w1.shape[0]
    n = batch * seq
    out_dtype = x.dtype

    cbytes = jnp.dtype(compute_dtype).itemsize
    xbytes = jnp.dtype(x.dtype).itemsize
    obytes = jnp.dtype(out_dtype).itemsize

    d_model_p = _round_up(d_model, 128)
    ff_128 = _round_up(ff_dim, 128)

    budget = _vmem_budget_bytes()
    big_vmem = budget >= 90 * 1024 * 1024          # v5e/v6e class vs v7x class

    # Generation-aware default token tile.
    if block_m is None:
        block_m = 1024 if big_vmem else 512

    tm = min(block_m, _round_up(n, 16))
    # v7x-class: split a single oversized token tile so the "parallel" axis
    # can occupy both TensorCores.
    if (not big_vmem) and _round_up(n, tm) == tm and n > 256:
        tm = max(16, _round_up((n + 1) // 2, 16))

    # --- choose path + clamp tiles to the VMEM budget ------------------------
    weights_2buf = 2 * 2 * d_model_p * ff_128 * cbytes   # W1 + W2, double-buffered

    def est_resident(tm_):
        return (2 * tm_ * d_model_p * (xbytes + obytes)   # x + out tiles (dbl-buffered)
                + weights_2buf                            # resident weights
                + tm_ * ff_128 * (4 + cbytes)             # f32 h + compute-dtype copy
                + 4 * (ff_128 + d_model_p) * 4)           # biases

    if mode == "resident":
        use_resident = True
    elif mode == "ktiled":
        use_resident = False
    else:
        use_resident = (weights_2buf <= budget // 2) and (est_resident(16) <= budget)

    if use_resident:
        ff_p = ff_128
        tf = ff_p
        while est_resident(tm) > budget and tm > 16:
            tm = max(16, _round_up(tm // 2, 16))
    else:
        tf = min(block_f, ff_128)

        def est_ktiled(tm_, tf_):
            return (2 * tm_ * d_model_p * (xbytes + obytes)  # x + out tiles
                    + 2 * 2 * d_model_p * tf_ * cbytes       # W1^T + W2^T slabs
                    + tm_ * d_model_p * 4                    # f32 accumulator
                    + tm_ * tf_ * (4 + cbytes)               # f32 h + cast copy
                    + 4 * (tf_ + d_model_p) * 4)             # biases

        while est_ktiled(tm, tf) > budget and (tm > 16 or tf > 128):
            if tm > 16 and (tm >= tf or tf <= 128):
                tm = max(16, _round_up(tm // 2, 16))
            else:
                tf = max(128, tf // 2)
        ff_p = _round_up(ff_128, tf)

    n_p = _round_up(n, tm)

    # --- prepare operands (pad only when needed; no activation cast) ---------
    x2d = x.reshape(n, d_model)
    if n_p != n or d_model_p != d_model:
        x2d = jnp.pad(x2d, ((0, n_p - n), (0, d_model_p - d_model)))

    # One-time weight prep (constant weights): transpose to matmul-natural
    # layout, cast to compute dtype, zero-pad (relu(0+0)=0, padded out cols
    # are sliced off -> exact).
    w1t = jnp.pad(w1.T.astype(compute_dtype),
                  ((0, d_model_p - d_model), (0, ff_p - ff_dim)))
    w2t = jnp.pad(w2.T.astype(compute_dtype),
                  ((0, ff_p - ff_dim), (0, d_model_p - d_model)))
    b1p = jnp.pad(b1.astype(jnp.float32), (0, ff_p - ff_dim)).reshape(1, ff_p)
    b2p = jnp.pad(b2.astype(jnp.float32),
                  (0, d_model_p - d_model)).reshape(1, d_model_p)

    vmem_limit = budget

    if use_resident:
        grid = (n_p // tm,)
        out2d = pl.pallas_call(
            _ffn_resident_kernel,
            out_shape=jax.ShapeDtypeStruct((n_p, d_model_p), out_dtype),
            grid_spec=pltpu.PrefetchScalarGridSpec(
                num_scalar_prefetch=0,
                grid=grid,
                in_specs=[
                    pl.BlockSpec((tm, d_model_p), lambda i: (i, 0)),     # x tile
                    pl.BlockSpec((d_model_p, ff_p), lambda i: (0, 0)),   # W1^T resident
                    pl.BlockSpec((1, ff_p), lambda i: (0, 0)),           # b1 resident
                    pl.BlockSpec((ff_p, d_model_p), lambda i: (0, 0)),   # W2^T resident
                    pl.BlockSpec((1, d_model_p), lambda i: (0, 0)),      # b2 resident
                ],
                out_specs=pl.BlockSpec((tm, d_model_p), lambda i: (i, 0)),
            ),
            compiler_params=pltpu.CompilerParams(
                dimension_semantics=("parallel",),
                vmem_limit_bytes=vmem_limit,
            ),
        )(x2d, w1t, b1p, w2t, b2p)
    else:
        grid = (n_p // tm, ff_p // tf)
        out2d = pl.pallas_call(
            _ffn_ktiled_kernel,
            out_shape=jax.ShapeDtypeStruct((n_p, d_model_p), out_dtype),
            grid_spec=pltpu.PrefetchScalarGridSpec(
                num_scalar_prefetch=0,
                grid=grid,
                in_specs=[
                    pl.BlockSpec((tm, d_model_p), lambda i, k: (i, 0)),  # x tile
                    pl.BlockSpec((d_model_p, tf), lambda i, k: (0, k)),  # W1^T slab
                    pl.BlockSpec((1, tf),         lambda i, k: (0, k)),  # b1 slab
                    pl.BlockSpec((tf, d_model_p), lambda i, k: (k, 0)),  # W2^T slab
                    pl.BlockSpec((1, d_model_p),  lambda i, k: (0, 0)),  # b2 resident
                ],
                out_specs=pl.BlockSpec((tm, d_model_p), lambda i, k: (i, 0)),
                scratch_shapes=[pltpu.VMEM((tm, d_model_p), jnp.float32)],
            ),
            compiler_params=pltpu.CompilerParams(
                dimension_semantics=("parallel", "arbitrary"),
                vmem_limit_bytes=vmem_limit,
            ),
        )(x2d, w1t, b1p, w2t, b2p)

    return out2d[:n, :d_model].reshape(batch, seq, d_model)


# TODO(synk): dropout with p > 0 would need pltpu.prng_seed/prng_random_bits;
#             the module's default p=0.0 makes it the identity, as implemented.


if __name__ == "__main__":
    # Small shapes consistent with the module's forward: (batch, seq, d_model).
    batch, seq, d_model, ff_dim = 2, 8, 32, 64

    key = jax.random.PRNGKey(0)
    kx, kw1, kb1, kw2, kb2 = jax.random.split(key, 5)

    x = jax.random.normal(kx, (batch, seq, d_model), dtype=jnp.float32)

    bound1 = 1.0 / (d_model ** 0.5)
    w1 = jax.random.uniform(kw1, (ff_dim, d_model), minval=-bound1, maxval=bound1,
                            dtype=jnp.float32)
    b1 = jax.random.uniform(kb1, (ff_dim,), minval=-bound1, maxval=bound1,
                            dtype=jnp.float32)
    bound2 = 1.0 / (ff_dim ** 0.5)
    w2 = jax.random.uniform(kw2, (d_model, ff_dim), minval=-bound2, maxval=bound2,
                            dtype=jnp.float32)
    b2 = jax.random.uniform(kb2, (d_model,), minval=-bound2, maxval=bound2,
                            dtype=jnp.float32)

    # Plain-JAX reference (same math as the PyTorch forward, dropout p=0.0).
    ref = jnp.maximum(x @ w1.T + b1, 0.0) @ w2.T + b2

    # 1) Auto path (weights fit VMEM -> resident), exact precision -- tight check.
    out_f32 = feed_forward(x, w1, b1, w2, b2, compute_dtype=jnp.float32)
    jax.block_until_ready(out_f32)
    assert out_f32.shape == (batch, seq, d_model)
    assert jnp.allclose(out_f32, ref, atol=1e-5, rtol=1e-5)

    # 2) Auto path, bf16 operands with f32 accumulation -- loose check.
    out_bf16 = feed_forward(x, w1, b1, w2, b2)
    jax.block_until_ready(out_bf16)
    assert out_bf16.shape == (batch, seq, d_model)
    assert jnp.max(jnp.abs(out_bf16.astype(jnp.float32) - ref)) < 5e-2

    # 3) Forced k-tiled fallback (multiple ff_dim slabs) -- exercises the
    #    accumulator path; exact precision, tight check.
    ff_dim2 = 320
    kw1b, kb1b, kw2b = jax.random.split(kw2, 3)
    w1b = jax.random.uniform(kw1b, (ff_dim2, d_model), minval=-bound1, maxval=bound1,
                             dtype=jnp.float32)
    b1b = jax.random.uniform(kb1b, (ff_dim2,), minval=-bound1, maxval=bound1,
                             dtype=jnp.float32)
    w2b = jax.random.uniform(kw2b, (d_model, ff_dim2), minval=-bound2, maxval=bound2,
                             dtype=jnp.float32)
    refb = jnp.maximum(x @ w1b.T + b1b, 0.0) @ w2b.T + b2
    out_kt = feed_forward(x, w1b, b1b, w2b, b2, block_f=128,
                          compute_dtype=jnp.float32, mode="ktiled")
    jax.block_until_ready(out_kt)
    assert out_kt.shape == (batch, seq, d_model)
    assert jnp.allclose(out_kt, refb, atol=1e-5, rtol=1e-5)

    print("KERNEL_OK")
</pallas_src>

<mosaic_0001>
module attributes {stable_mosaic.version = 11 : i64} {
  func.func @_ffn_resident_kernel(%arg0: i32, %arg1: memref<16x128xf32, #tpu.memory_space<vmem>>, %arg2: memref<128x128xf32, #tpu.memory_space<vmem>>, %arg3: memref<1x128xf32, #tpu.memory_space<vmem>>, %arg4: memref<128x128xf32, #tpu.memory_space<vmem>>, %arg5: memref<1x128xf32, #tpu.memory_space<vmem>>, %arg6: memref<16x128xf32, #tpu.memory_space<vmem>>) attributes {dimension_semantics = [#tpu.dimension_semantics<parallel>], iteration_bounds = array<i64: 1>, scalar_prefetch = 0 : i64, scratch_operands = 0 : i64, tpu.core_type = #tpu.core_type<tc>, window_params = [{transform_indices = @transform_0, window_bounds = array<i64: 16, 128>}, {pipeline_mode = #tpu.pipeline_mode<synchronous>, transform_indices = @transform_1, window_bounds = array<i64: 128, 128>}, {pipeline_mode = #tpu.pipeline_mode<synchronous>, transform_indices = @transform_2, window_bounds = array<i64: 1, 128>}, {pipeline_mode = #tpu.pipeline_mode<synchronous>, transform_indices = @transform_3, window_bounds = array<i64: 128, 128>}, {pipeline_mode = #tpu.pipeline_mode<synchronous>, transform_indices = @transform_4, window_bounds = array<i64: 1, 128>}, {transform_indices = @transform_5, window_bounds = array<i64: 16, 128>}]} {
    %c0 = arith.constant 0 : index
    %c0_0 = arith.constant 0 : index
    %0 = vector.load %arg1[%c0, %c0_0] : memref<16x128xf32, #tpu.memory_space<vmem>>, vector<16x128xf32>
    %c0_1 = arith.constant 0 : index
    %c0_2 = arith.constant 0 : index
    %1 = vector.load %arg2[%c0_1, %c0_2] : memref<128x128xf32, #tpu.memory_space<vmem>>, vector<128x128xf32>
    %cst = arith.constant dense<0.000000e+00> : vector<16x128xf32>
    %2 = tpu.matmul %0, %1, %cst {dimension_numbers = #tpu.dot_dimension_numbers<[1], [0], [0], [1], [0, 0, 1, 1], [], []>} : vector<16x128xf32>, vector<128x128xf32>, vector<16x128xf32> -> vector<16x128xf32>
    %c0_3 = arith.constant 0 : index
    %c0_4 = arith.constant 0 : index
    %3 = vector.load %arg3[%c0_3, %c0_4] : memref<1x128xf32, #tpu.memory_space<vmem>>, vector<1x128xf32>
    %4 = vector.broadcast %3 : vector<1x128xf32> to vector<16x128xf32>
    %5 = arith.addf %2, %4 : vector<16x128xf32>
    %cst_5 = arith.constant 0.000000e+00 : f32
    %6 = vector.broadcast %cst_5 : f32 to vector<16x128xf32>
    %7 = arith.maximumf %5, %6 : vector<16x128xf32>
    %c0_6 = arith.constant 0 : index
    %c0_7 = arith.constant 0 : index
    %8 = vector.load %arg4[%c0_6, %c0_7] : memref<128x128xf32, #tpu.memory_space<vmem>>, vector<128x128xf32>
    %cst_8 = arith.constant dense<0.000000e+00> : vector<16x128xf32>
    %9 = tpu.matmul %7, %8, %cst_8 {dimension_numbers = #tpu.dot_dimension_numbers<[1], [0], [0], [1], [0, 0, 1, 1], [], []>} : vector<16x128xf32>, vector<128x128xf32>, vector<16x128xf32> -> vector<16x128xf32>
    %c0_9 = arith.constant 0 : index
    %c0_10 = arith.constant 0 : index
    %10 = vector.load %arg5[%c0_9, %c0_10] : memref<1x128xf32, #tpu.memory_space<vmem>>, vector<1x128xf32>
    %11 = vector.broadcast %10 : vector<1x128xf32> to vector<16x128xf32>
    %12 = arith.addf %9, %11 : vector<16x128xf32>
    %c0_11 = arith.constant 0 : index
    %c0_12 = arith.constant 0 : index
    %13 = vector.load %arg6[%c0_11, %c0_12] : memref<16x128xf32, #tpu.memory_space<vmem>>, vector<16x128xf32>
    tpu.vector_store %arg6[%c0_11, %c0_12], %12 {strides = array<i32>} : memref<16x128xf32, #tpu.memory_space<vmem>>, vector<16x128xf32>,
    return
  }
  func.func @transform_0(%arg0: i32) -> (i32, i32) {
    %c0_i32 = arith.constant 0 : i32
    %c0_i32_0 = arith.constant 0 : i32
    return %arg0, %c0_i32 : i32, i32
  }
  func.func @transform_1(%arg0: i32) -> (i32, i32) {
    %c0_i32 = arith.constant 0 : i32
    %c0_i32_0 = arith.constant 0 : i32
    %c0_i32_1 = arith.constant 0 : i32
    return %c0_i32, %c0_i32_0 : i32, i32
  }
  func.func @transform_2(%arg0: i32) -> (i32, i32) {
    %c0_i32 = arith.constant 0 : i32
    %c0_i32_0 = arith.constant 0 : i32
    %c0_i32_1 = arith.constant 0 : i32
    return %c0_i32, %c0_i32_0 : i32, i32
  }
  func.func @transform_3(%arg0: i32) -> (i32, i32) {
    %c0_i32 = arith.constant 0 : i32
    %c0_i32_0 = arith.constant 0 : i32
    %c0_i32_1 = arith.constant 0 : i32
    return %c0_i32, %c0_i32_0 : i32, i32
  }
  func.func @transform_4(%arg0: i32) -> (i32, i32) {
    %c0_i32 = arith.constant 0 : i32
    %c0_i32_0 = arith.constant 0 : i32
    %c0_i32_1 = arith.constant 0 : i32
    return %c0_i32, %c0_i32_0 : i32, i32
  }
  func.func @transform_5(%arg0: i32) -> (i32, i32) {
    %c0_i32 = arith.constant 0 : i32
    %c0_i32_0 = arith.constant 0 : i32
    return %arg0, %c0_i32 : i32, i32
  }
}

</mosaic_0001>

<bundles_post_ra>
// kernel: feed_forward.1
= control target key start
LH: loop header
LB: loop body
LE: loop exit
PB: predicated region body
PF: predicated region fallthrough
CT: control target
= control target key end

     0   :  { %s294_s1 = inlined_call_operand.vmem [shape: f32[128,128], index: 1, kind: input, shape index: {}]   ;;  %s295_s3 = inlined_call_operand.vmem [shape: f32[128,128], index: 3, kind: input, shape index: {}]   ;;  %s296_s2 = inlined_call_operand.vmem [shape: f32[1,128], index: 2, kind: input, shape index: {}]   ;;  %s297_s0 = inlined_call_operand.vmem [shape: f32[16,128], index: 0, kind: input, shape index: {}]   ;;  %s298_s4 = inlined_call_operand.vmem [shape: f32[1,128], index: 4, kind: input, shape index: {}]   ;;  %s299_s5 = inlined_call_operand.vmem [shape: f32[16,128], index: 5, kind: output, shape index: {}]  }
   0x1   :  { %v37_v0 = vld [vmem:[%s294_s1 + $0x78] sm:$0xff]  ;;  %v36_v1 = vld [vmem:[%s294_s1 + $0x70] sm:$0xff]  ;;  %v35_v2 = vld [vmem:[%s294_s1 + $0x68] sm:$0xff] }
   0x2   :  { %116 = vmatpush.msra.mxu2 %v37_v0  ;;  %42 = vmatpush.msra.mxu0 %v37_v0  ;;  %v34_v3 = vld [vmem:[%s294_s1 + $0x60] sm:$0xff]  ;;  %v33_v4 = vld [vmem:[%s294_s1 + $0x58] sm:$0xff]  ;;  %v81_v6 = vld [vmem:[%s295_s3 + $0x70] sm:$0xff] }
   0x3   :  { %v82_v5 = vld [vmem:[%s295_s3 + $0x78] sm:$0xff]  ;;  %v32_v7 = vld [vmem:[%s294_s1 + $0x50] sm:$0xff]  ;;  %v80_v8 = vld [vmem:[%s295_s3 + $0x68] sm:$0xff] }
   0x4   :  { %117 = vmatpush.msra.mxu2 %v36_v1  ;;  %43 = vmatpush.msra.mxu0 %v36_v1  ;;  %v31_v9 = vld [vmem:[%s294_s1 + $0x48] sm:$0xff]  ;;  %v79_v10 = vld [vmem:[%s295_s3 + $0x60] sm:$0xff]  ;;  %v78_v12 = vld [vmem:[%s295_s3 + $0x58] sm:$0xff] }
   0x5   :  { %132 = vmatpush.msra.mxu3 %v82_v5  ;;  %87 = vmatpush.msra.mxu1 %v82_v5  ;;  %v30_v11 = vld [vmem:[%s294_s1 + $0x40] sm:$0xff]  ;;  %v29_v13 = vld [vmem:[%s294_s1 + $0x38] sm:$0xff]  ;;  %v77_v14 = vld [vmem:[%s295_s3 + $0x50] sm:$0xff] }
   0x6   :  { %118 = vmatpush.msra.mxu2 %v35_v2  ;;  %44 = vmatpush.msra.mxu0 %v35_v2  ;;  %v28_v15 = vld [vmem:[%s294_s1 + $0x30] sm:$0xff]  ;;  %v76_v16 = vld [vmem:[%s295_s3 + $0x48] sm:$0xff]  ;;  %v75_v18 = vld [vmem:[%s295_s3 + $0x40] sm:$0xff] }
   0x7   :  { %133 = vmatpush.msra.mxu3 %v81_v6  ;;  %88 = vmatpush.msra.mxu1 %v81_v6  ;;  %v27_v17 = vld [vmem:[%s294_s1 + $0x28] sm:$0xff]  ;;  %v26_v19 = vld [vmem:[%s294_s1 + $0x20] sm:$0xff]  ;;  %v74_v20 = vld [vmem:[%s295_s3 + $0x38] sm:$0xff] }
   0x8   :  { %119 = vmatpush.msra.mxu2 %v34_v3  ;;  %45 = vmatpush.msra.mxu0 %v34_v3  ;;  %v25_v21 = vld [vmem:[%s294_s1 + $0x18] sm:$0xff]  ;;  %v73_v22 = vld [vmem:[%s295_s3 + $0x30] sm:$0xff]  ;;  %v72_v24 = vld [vmem:[%s295_s3 + $0x28] sm:$0xff] }
   0x9   :  { %134 = vmatpush.msra.mxu3 %v80_v8  ;;  %89 = vmatpush.msra.mxu1 %v80_v8  ;;  %v24_v23 = vld [vmem:[%s294_s1 + $0x10] sm:$0xff]  ;;  %v23_v25 = vld [vmem:[%s294_s1 + $0x8] sm:$0xff]  ;;  %v71_v26 = vld [vmem:[%s295_s3 + $0x20] sm:$0xff] }
   0xa   :  { %120 = vmatpush.msra.mxu2 %v33_v4  ;;  %46 = vmatpush.msra.mxu0 %v33_v4  ;;  %v22_v27 = vld [vmem:[%s294_s1] sm:$0xff]  ;;  %v21_v28 = vld [vmem:[%s297_s0 + $0x8] sm:$0xff]  ;;  %v70_v30 = vld [vmem:[%s295_s3 + $0x18] sm:$0xff] }
   0xb   :  { %135 = vmatpush.msra.mxu3 %v79_v10  ;;  %90 = vmatpush.msra.mxu1 %v79_v10  ;;  %v20_v29 = vld [vmem:[%s297_s0] sm:$0xff]  ;;  %v69_v31 = vld [vmem:[%s295_s3 + $0x10] sm:$0xff]  ;;  %v68_v32 = vld [vmem:[%s295_s3 + $0x8] sm:$0xff] }
   0xc   :  { %121 = vmatpush.msra.mxu2 %v32_v7  ;;  %47 = vmatpush.msra.mxu0 %v32_v7  ;;  %v67_v33 = vld [vmem:[%s295_s3] sm:$0xff] }
   0xd   :  { %136 = vmatpush.msra.mxu3 %v78_v12  ;;  %91 = vmatpush.msra.mxu1 %v78_v12  ;;  %v148_v34 = vld [vmem:[%s296_s2] ss:$0 sm:$0xff] }
   0xe   :  { %122 = vmatpush.msra.mxu2 %v31_v9  ;;  %48 = vmatpush.msra.mxu0 %v31_v9  ;;  %v149_v41 = vld [vmem:[%s298_s4] ss:$0 sm:$0xff] }
   0xf   :  { %137 = vmatpush.msra.mxu3 %v77_v14  ;;  %92 = vmatpush.msra.mxu1 %v77_v14 }
  0x10   :  { %123 = vmatpush.msra.mxu2 %v30_v11  ;;  %49 = vmatpush.msra.mxu0 %v30_v11 }
  0x11   :  { %138 = vmatpush.msra.mxu3 %v76_v16  ;;  %93 = vmatpush.msra.mxu1 %v76_v16 }
  0x12   :  { %124 = vmatpush.msra.mxu2 %v29_v13  ;;  %50 = vmatpush.msra.mxu0 %v29_v13 }
  0x13   :  { %139 = vmatpush.msra.mxu3 %v75_v18  ;;  %94 = vmatpush.msra.mxu1 %v75_v18 }
  0x14   :  { %125 = vmatpush.msra.mxu2 %v28_v15  ;;  %51 = vmatpush.msra.mxu0 %v28_v15 }
  0x15   :  { %140 = vmatpush.msra.mxu3 %v74_v20  ;;  %95 = vmatpush.msra.mxu1 %v74_v20 }
  0x16   :  { %126 = vmatpush.msra.mxu2 %v27_v17  ;;  %52 = vmatpush.msra.mxu0 %v27_v17 }
  0x17   :  { %141 = vmatpush.msra.mxu3 %v73_v22  ;;  %96 = vmatpush.msra.mxu1 %v73_v22 }
  0x18   :  { %127 = vmatpush.msra.mxu2 %v26_v19  ;;  %53 = vmatpush.msra.mxu0 %v26_v19 }
  0x19   :  { %142 = vmatpush.msra.mxu3 %v72_v24  ;;  %97 = vmatpush.msra.mxu1 %v72_v24 }
  0x1a   :  { %128 = vmatpush.msra.mxu2 %v25_v21  ;;  %54 = vmatpush.msra.mxu0 %v25_v21 }
  0x1b   :  { %143 = vmatpush.msra.mxu3 %v71_v26  ;;  %98 = vmatpush.msra.mxu1 %v71_v26 }
  0x1c   :  { %129 = vmatpush.msra.mxu2 %v24_v23  ;;  %55 = vmatpush.msra.mxu0 %v24_v23 }
  0x1d   :  { %144 = vmatpush.msra.mxu3 %v70_v30  ;;  %99 = vmatpush.msra.mxu1 %v70_v30 }
  0x1e   :  { %130 = vmatpush.msra.mxu2 %v23_v25  ;;  %56 = vmatpush.msra.mxu0 %v23_v25 }
  0x1f   :  { %145 = vmatpush.msra.mxu3 %v69_v31  ;;  %100 = vmatpush.msra.mxu1 %v69_v31 }
  0x20   :  { %131 = vmatpush.msra.mxu2 %v22_v27  ;;  %57 = vmatpush.msra.mxu0 %v22_v27 }
  0x21   :  { %61 = vmatmul.f32.vlgmr.msra.gmra.mxu2 %v21_v28  ;;  %58 = vmatmul.f32.vlgmr.msra.gmra.mxu0 %v20_v29 }
  0x22   :  { %146 = vmatpush.msra.mxu3 %v68_v32  ;;  %101 = vmatpush.msra.mxu1 %v68_v32 }
  0x24   :  { %147 = vmatpush.msra.mxu3 %v67_v33  ;;  %102 = vmatpush.msra.mxu1 %v67_v33 }
  0x9e   :  { %v59_v35 = vpop.f32.mrf.mxu0 }
  0x9f   :  { %v60_v36 = vadd.f32 %v148_v34, %v59_v35 }
  0xa1   :  { %v65_v37 = vmax.f32 %v60_v36, 0.0 }
  0xa3   :  { %103 = vmatmul.f32.vlgmr.msra.gmra.mxu1 %v65_v37 }
  0xa4   :  { %v62_v38 = vpop.f32.mrf.mxu2 }
  0xa5   :  { %v63_v39 = vadd.f32 %v148_v34, %v62_v38 }
  0xa7   :  { %v66_v40 = vmax.f32 %v63_v39, 0.0 }
  0xa9   :  { %106 = vmatmul.f32.vlgmr.msra.gmra.mxu3 %v66_v40 }
 0x120   :  { %v104_v42 = vpop.f32.mrf.mxu1 }
 0x121   :  { %v105_v43 = vadd.f32 %v149_v41, %v104_v42 }
 0x123   :  { %110 = vst [vmem:[%s299_s5] sm:$0xff] %v105_v43 }
 0x12c   :  { %v107_v44 = vpop.f32.mrf.mxu3 }
 0x12d   :  { %v108_v45 = vadd.f32 %v149_v41, %v107_v44 }
 0x12f   :  { %111 = vst [vmem:[%s299_s5 + $0x8] sm:$0xff] %v108_v45 }

</bundles_post_ra>
